<compile_context>
chip_gen: v7x
topology: tpu7x:2x2x1
jax: 0.10.0
libtpu: 0.0.40
codegen_flags: <defaults>
</compile_context>

<pallas_src>
import functools
import math

import jax
import jax.numpy as jnp
from jax.experimental import pallas as pl
from jax.experimental.pallas import tpu as pltpu


# ----------------------------------------------------------------------------
# Pallas kernel: fused embedding MLP + MADE affine flow + log-prob reduction
# ----------------------------------------------------------------------------
def mafnpe_kernel(x_ref, y_ref, t_ref,
                  we1y_ref, we1t_ref, be1_ref, we2_ref, be2_ref,
                  wx1_ref, wc1_ref, bm1_ref, wmuls_ref, bmuls_ref,
                  logp_ref, *, dx_true):
    bf16 = jnp.bfloat16

    x = x_ref[...]                      # [TB, DxP]   f32 (zero-padded lanes)
    yb = y_ref[...]                     # [TB, DyP]   f32 (zero-padded lanes)
    tb = t_ref[...]                     # [TB, 1]     f32

    # ---- embedding MLP: ctx = W2 @ relu(W1 @ [y, t] + b1) + b2 --------------
    # concat(y, t) @ W1 == y @ W1_y + t * W1_t_row   (rank-1 term on the VPU)
    h = (jnp.dot(yb.astype(bf16), we1y_ref[...],
                 preferred_element_type=jnp.float32)
         + tb * we1t_ref[...]
         + be1_ref[...])
    h = jnp.maximum(h, 0.0)
    ctx = (jnp.dot(h.astype(bf16), we2_ref[...],
                   preferred_element_type=jnp.float32)
           + be2_ref[...])

    # ---- MAF: single MADE affine layer conditioned on ctx -------------------
    # concat(x, ctx) @ W1 == x @ Wx1 + ctx @ Wc1  (avoids in-kernel concat)
    hm = (jnp.dot(x.astype(bf16), wx1_ref[...],
                  preferred_element_type=jnp.float32)
          + jnp.dot(ctx.astype(bf16), wc1_ref[...],
                    preferred_element_type=jnp.float32)
          + bm1_ref[...])
    hm = jnp.maximum(hm, 0.0)

    # fused (mu | log_sigma) output heads: one MXU pass, slice at a lane
    # boundary (DxP is a multiple of 128).
    dxp = x.shape[-1]
    muls = (jnp.dot(hm.astype(bf16), wmuls_ref[...],
                    preferred_element_type=jnp.float32)
            + bmuls_ref[...])
    mu = muls[:, :dxp]
    ls = muls[:, dxp:]

    # ---- affine transform + standard-normal log-pdf (all f32) ---------------
    # Padded lanes: x = mu = ls = 0  ->  z = 0, terms = 0 (exact).
    z = (x - mu) * jnp.exp(-ls)
    terms = -0.5 * (z * z) - ls                         # [TB, DxP]

    # Lane-dense reduction: XLU transpose then sublane reduce -> [1, TB]
    s = jnp.sum(terms.T, axis=0, keepdims=True)         # [1, TB]
    const = jnp.float32(-0.5 * dx_true * math.log(2.0 * math.pi))
    logp_ref[...] = (s + const).reshape(logp_ref.shape)  # [1, 1, TB]


# ----------------------------------------------------------------------------
# Parameter setup (glue): true-size weights, MADE masks, padding, head fusion
# ----------------------------------------------------------------------------
def _round_up(n, m):
    return ((n + m - 1) // m) * m


def make_params(key, dy, dt, dx, H, E, Hm, *, lane=128):
    assert dt == 1, "time conditioner is a single scalar per sample"
    ks = jax.random.split(key, 6)
    scale = lambda fan_in: 1.0 / math.sqrt(fan_in)

    # ---- true-size weights ---------------------------------------------------
    we1 = jax.random.normal(ks[0], (dy + dt, H), jnp.float32) * scale(dy + dt)
    we2 = jax.random.normal(ks[1], (H, E), jnp.float32) * scale(H)
    wx1 = jax.random.normal(ks[2], (dx, Hm), jnp.float32) * scale(dx + E)
    wc1 = jax.random.normal(ks[3], (E, Hm), jnp.float32) * scale(dx + E)
    wmu = jax.random.normal(ks[4], (Hm, dx), jnp.float32) * scale(Hm)
    wls = jax.random.normal(ks[5], (Hm, dx), jnp.float32) * scale(Hm) * 0.1

    # ---- MADE autoregressive masks (applied to weights at setup time) -------
    deg_x = jnp.arange(1, dx + 1)                                     # [Dx]
    deg_h = (jnp.arange(Hm) % max(dx - 1, 1)) + 1                     # [Hm]
    mask_in = (deg_h[None, :] >= deg_x[:, None]).astype(jnp.float32)  # [Dx, Hm]
    mask_out = (deg_x[None, :] > deg_h[:, None]).astype(jnp.float32)  # [Hm, Dx]
    wx1 = wx1 * mask_in
    wmu = wmu * mask_out
    wls = wls * mask_out

    # ---- pad to MXU-friendly 128-lane widths, fuse mu/ls heads ---------------
    DyP = _round_up(dy, lane)
    HP = _round_up(H, lane)
    EP = _round_up(E, lane)
    HmP = _round_up(Hm, lane)
    DxP = _round_up(dx, lane)

    def pad2(a, rows, cols, dtype):
        out = jnp.zeros((rows, cols), jnp.float32)
        out = out.at[:a.shape[0], :a.shape[1]].set(a)
        return out.astype(dtype)

    bf16 = jnp.bfloat16
    we1_y = pad2(we1[:dy], DyP, HP, bf16)            # MXU operand -> bf16
    we1_t = pad2(we1[dy:], 1, HP, jnp.float32)       # rank-1 row, stays on VPU
    be1 = jnp.zeros((1, HP), jnp.float32)
    we2_p = pad2(we2, HP, EP, bf16)
    be2 = jnp.zeros((1, EP), jnp.float32)
    wx1_p = pad2(wx1, DxP, HmP, bf16)
    wc1_p = pad2(wc1, EP, HmP, bf16)
    bm1 = jnp.zeros((1, HmP), jnp.float32)
    wmuls = jnp.concatenate(
        [pad2(wmu, HmP, DxP, jnp.float32), pad2(wls, HmP, DxP, jnp.float32)],
        axis=1).astype(bf16)                         # [HmP, 2*DxP]
    bmuls = jnp.zeros((1, 2 * DxP), jnp.float32)

    return (we1_y, we1_t, be1, we2_p, be2, wx1_p, wc1_p, bm1, wmuls, bmuls)


# ----------------------------------------------------------------------------
# Wrapper: layout glue + pallas_call (batch-tiled, weights resident)
# ----------------------------------------------------------------------------
def mafnpe_forward(x, y, t, params, *, tile_b=128):
    assert tile_b % 128 == 0, "tile_b must be a multiple of 128 (lane width)"
    (we1_y, we1_t, be1, we2_p, be2, wx1_p, wc1_p, bm1, wmuls, bmuls) = params

    B = x.shape[0]
    x2 = x.reshape(B, -1).astype(jnp.float32)        # [B, Dx]
    y2 = y.reshape(B, -1).astype(jnp.float32)        # [B, Dy]
    t2 = t.reshape(B, -1).astype(jnp.float32)        # [B, 1]
    dx = x2.shape[1]

    DxP = wx1_p.shape[0]
    DyP = we1_y.shape[0]

    # zero-pad feature lanes to the padded parameter widths (exactness of the
    # log-prob is preserved by the zero-padded weight rows/columns).
    x2 = jnp.pad(x2, ((0, 0), (0, DxP - x2.shape[1])))
    y2 = jnp.pad(y2, ((0, 0), (0, DyP - y2.shape[1])))

    # zero-pad batch to a multiple of the batch tile.
    Bp = pl.cdiv(B, tile_b) * tile_b
    pad_b = Bp - B
    if pad_b:
        x2 = jnp.pad(x2, ((0, pad_b), (0, 0)))
        y2 = jnp.pad(y2, ((0, pad_b), (0, 0)))
        t2 = jnp.pad(t2, ((0, pad_b), (0, 0)))
    grid_n = Bp // tile_b

    kernel = functools.partial(mafnpe_kernel, dx_true=dx)

    batch_specs = [
        pl.BlockSpec((tile_b, DxP), lambda i: (i, 0)),      # x
        pl.BlockSpec((tile_b, DyP), lambda i: (i, 0)),      # y
        pl.BlockSpec((tile_b, t2.shape[1]), lambda i: (i, 0)),  # t
    ]
    # weights/biases: constant index_map -> DMA'd once, stay resident in VMEM
    weight_specs = [pl.BlockSpec(p.shape, lambda i: (0, 0)) for p in params]

    out = pl.pallas_call(
        kernel,
        out_shape=jax.ShapeDtypeStruct((grid_n, 1, tile_b), jnp.float32),
        grid=(grid_n,),
        in_specs=batch_specs + weight_specs,
        out_specs=pl.BlockSpec((1, 1, tile_b), lambda i: (i, 0, 0)),
        compiler_params=pltpu.CompilerParams(
            dimension_semantics=("parallel",)),
    )(x2, y2, t2, *params)

    return out.reshape(Bp)[:B]          # [B] log-probabilities == flow(x, y_t)


# TODO(synk): NSF's spline transform and `sample()` (inverse pass) are not
# implemented; a single MADE affine layer stands in for the injected flow.

if __name__ == "__main__":
    # Small shapes consistent with the module's forward:
    #   x: [B, 3, 4]  -> flattened to Dx = 12
    #   y: [B, C, L]  (torch NCL) -> flattened, Dy = C*L
    #   t: [B, 1]
    B, C, L = 8, 4, 16
    Dx, Dt = 12, 1
    Dy = C * L
    H, E, Hm = 32, 32, 64

    key = jax.random.PRNGKey(0)
    kx, ky, kt, kp = jax.random.split(key, 4)

    x = jax.random.normal(kx, (B, 3, 4), jnp.float32)   # x.reshape(B,-1) -> [B,12]
    y = jax.random.normal(ky, (B, C, L), jnp.float32)
    t = jax.random.uniform(kt, (B, Dt), jnp.float32)

    params = make_params(kp, Dy, Dt, Dx, H, E, Hm)

    fwd = jax.jit(functools.partial(mafnpe_forward, tile_b=128))
    log_p = fwd(x, y, t, params)
    jax.block_until_ready(log_p)

    assert log_p.shape == (B,)
    assert bool(jnp.all(jnp.isfinite(log_p)))
    # MafNPE.loss would be:  loss = -log_p.mean()
    print("KERNEL_OK")
</pallas_src>

<mosaic_0001>
module attributes {stable_mosaic.version = 11 : i64} {
  func.func @mafnpe_kernel(%arg0: i32, %arg1: memref<128x128xf32, #tpu.memory_space<vmem>>, %arg2: memref<128x128xf32, #tpu.memory_space<vmem>>, %arg3: memref<128x1xf32, #tpu.memory_space<vmem>>, %arg4: memref<128x128xbf16, #tpu.memory_space<vmem>>, %arg5: memref<1x128xf32, #tpu.memory_space<vmem>>, %arg6: memref<1x128xf32, #tpu.memory_space<vmem>>, %arg7: memref<128x128xbf16, #tpu.memory_space<vmem>>, %arg8: memref<1x128xf32, #tpu.memory_space<vmem>>, %arg9: memref<128x128xbf16, #tpu.memory_space<vmem>>, %arg10: memref<128x128xbf16, #tpu.memory_space<vmem>>, %arg11: memref<1x128xf32, #tpu.memory_space<vmem>>, %arg12: memref<128x256xbf16, #tpu.memory_space<vmem>>, %arg13: memref<1x256xf32, #tpu.memory_space<vmem>>, %arg14: memref<1x1x128xf32, #tpu.memory_space<vmem>>) attributes {dimension_semantics = [#tpu.dimension_semantics<parallel>], iteration_bounds = array<i64: 1>, scalar_prefetch = 0 : i64, scratch_operands = 0 : i64, tpu.core_type = #tpu.core_type<tc>, window_params = [{transform_indices = @transform_0, window_bounds = array<i64: 128, 128>}, {transform_indices = @transform_1, window_bounds = array<i64: 128, 128>}, {transform_indices = @transform_2, window_bounds = array<i64: 128, 1>}, {pipeline_mode = #tpu.pipeline_mode<synchronous>, transform_indices = @transform_3, window_bounds = array<i64: 128, 128>}, {pipeline_mode = #tpu.pipeline_mode<synchronous>, transform_indices = @transform_4, window_bounds = array<i64: 1, 128>}, {pipeline_mode = #tpu.pipeline_mode<synchronous>, transform_indices = @transform_5, window_bounds = array<i64: 1, 128>}, {pipeline_mode = #tpu.pipeline_mode<synchronous>, transform_indices = @transform_6, window_bounds = array<i64: 128, 128>}, {pipeline_mode = #tpu.pipeline_mode<synchronous>, transform_indices = @transform_7, window_bounds = array<i64: 1, 128>}, {pipeline_mode = #tpu.pipeline_mode<synchronous>, transform_indices = @transform_8, window_bounds = array<i64: 128, 128>}, {pipeline_mode = #tpu.pipeline_mode<synchronous>, transform_indices = @transform_9, window_bounds = array<i64: 128, 128>}, {pipeline_mode = #tpu.pipeline_mode<synchronous>, transform_indices = @transform_10, window_bounds = array<i64: 1, 128>}, {pipeline_mode = #tpu.pipeline_mode<synchronous>, transform_indices = @transform_11, window_bounds = array<i64: 128, 256>}, {pipeline_mode = #tpu.pipeline_mode<synchronous>, transform_indices = @transform_12, window_bounds = array<i64: 1, 256>}, {transform_indices = @transform_13, window_bounds = array<i64: 1, 1, 128>}]} {
    %c0 = arith.constant 0 : index
    %c0_0 = arith.constant 0 : index
    %0 = vector.load %arg1[%c0, %c0_0] : memref<128x128xf32, #tpu.memory_space<vmem>>, vector<128x128xf32>
    %c0_1 = arith.constant 0 : index
    %c0_2 = arith.constant 0 : index
    %1 = vector.load %arg2[%c0_1, %c0_2] : memref<128x128xf32, #tpu.memory_space<vmem>>, vector<128x128xf32>
    %c0_3 = arith.constant 0 : index
    %c0_4 = arith.constant 0 : index
    %2 = vector.load %arg3[%c0_3, %c0_4] : memref<128x1xf32, #tpu.memory_space<vmem>>, vector<128x1xf32>
    %3 = arith.truncf %1 : vector<128x128xf32> to vector<128x128xbf16>
    %c0_5 = arith.constant 0 : index
    %c0_6 = arith.constant 0 : index
    %4 = vector.load %arg4[%c0_5, %c0_6] : memref<128x128xbf16, #tpu.memory_space<vmem>>, vector<128x128xbf16>
    %cst = arith.constant dense<0.000000e+00> : vector<128x128xf32>
    %5 = tpu.matmul %3, %4, %cst {dimension_numbers = #tpu.dot_dimension_numbers<[1], [0], [0], [1], [0, 0, 1, 1], [], []>} : vector<128x128xbf16>, vector<128x128xbf16>, vector<128x128xf32> -> vector<128x128xf32>
    %c0_7 = arith.constant 0 : index
    %c0_8 = arith.constant 0 : index
    %6 = vector.load %arg5[%c0_7, %c0_8] : memref<1x128xf32, #tpu.memory_space<vmem>>, vector<1x128xf32>
    %7 = vector.broadcast %2 : vector<128x1xf32> to vector<128x128xf32>
    %8 = vector.broadcast %6 : vector<1x128xf32> to vector<128x128xf32>
    %9 = arith.mulf %7, %8 : vector<128x128xf32>
    %10 = arith.addf %5, %9 : vector<128x128xf32>
    %c0_9 = arith.constant 0 : index
    %c0_10 = arith.constant 0 : index
    %11 = vector.load %arg6[%c0_9, %c0_10] : memref<1x128xf32, #tpu.memory_space<vmem>>, vector<1x128xf32>
    %12 = vector.broadcast %11 : vector<1x128xf32> to vector<128x128xf32>
    %13 = arith.addf %10, %12 : vector<128x128xf32>
    %cst_11 = arith.constant 0.000000e+00 : f32
    %14 = vector.broadcast %cst_11 : f32 to vector<128x128xf32>
    %15 = arith.maximumf %13, %14 : vector<128x128xf32>
    %16 = arith.truncf %15 : vector<128x128xf32> to vector<128x128xbf16>
    %c0_12 = arith.constant 0 : index
    %c0_13 = arith.constant 0 : index
    %17 = vector.load %arg7[%c0_12, %c0_13] : memref<128x128xbf16, #tpu.memory_space<vmem>>, vector<128x128xbf16>
    %cst_14 = arith.constant dense<0.000000e+00> : vector<128x128xf32>
    %18 = tpu.matmul %16, %17, %cst_14 {dimension_numbers = #tpu.dot_dimension_numbers<[1], [0], [0], [1], [0, 0, 1, 1], [], []>} : vector<128x128xbf16>, vector<128x128xbf16>, vector<128x128xf32> -> vector<128x128xf32>
    %c0_15 = arith.constant 0 : index
    %c0_16 = arith.constant 0 : index
    %19 = vector.load %arg8[%c0_15, %c0_16] : memref<1x128xf32, #tpu.memory_space<vmem>>, vector<1x128xf32>
    %20 = vector.broadcast %19 : vector<1x128xf32> to vector<128x128xf32>
    %21 = arith.addf %18, %20 : vector<128x128xf32>
    %22 = arith.truncf %0 : vector<128x128xf32> to vector<128x128xbf16>
    %c0_17 = arith.constant 0 : index
    %c0_18 = arith.constant 0 : index
    %23 = vector.load %arg9[%c0_17, %c0_18] : memref<128x128xbf16, #tpu.memory_space<vmem>>, vector<128x128xbf16>
    %cst_19 = arith.constant dense<0.000000e+00> : vector<128x128xf32>
    %24 = tpu.matmul %22, %23, %cst_19 {dimension_numbers = #tpu.dot_dimension_numbers<[1], [0], [0], [1], [0, 0, 1, 1], [], []>} : vector<128x128xbf16>, vector<128x128xbf16>, vector<128x128xf32> -> vector<128x128xf32>
    %25 = arith.truncf %21 : vector<128x128xf32> to vector<128x128xbf16>
    %c0_20 = arith.constant 0 : index
    %c0_21 = arith.constant 0 : index
    %26 = vector.load %arg10[%c0_20, %c0_21] : memref<128x128xbf16, #tpu.memory_space<vmem>>, vector<128x128xbf16>
    %cst_22 = arith.constant dense<0.000000e+00> : vector<128x128xf32>
    %27 = tpu.matmul %25, %26, %cst_22 {dimension_numbers = #tpu.dot_dimension_numbers<[1], [0], [0], [1], [0, 0, 1, 1], [], []>} : vector<128x128xbf16>, vector<128x128xbf16>, vector<128x128xf32> -> vector<128x128xf32>
    %28 = arith.addf %24, %27 : vector<128x128xf32>
    %c0_23 = arith.constant 0 : index
    %c0_24 = arith.constant 0 : index
    %29 = vector.load %arg11[%c0_23, %c0_24] : memref<1x128xf32, #tpu.memory_space<vmem>>, vector<1x128xf32>
    %30 = vector.broadcast %29 : vector<1x128xf32> to vector<128x128xf32>
    %31 = arith.addf %28, %30 : vector<128x128xf32>
    %cst_25 = arith.constant 0.000000e+00 : f32
    %32 = vector.broadcast %cst_25 : f32 to vector<128x128xf32>
    %33 = arith.maximumf %31, %32 : vector<128x128xf32>
    %34 = arith.truncf %33 : vector<128x128xf32> to vector<128x128xbf16>
    %c0_26 = arith.constant 0 : index
    %c0_27 = arith.constant 0 : index
    %35 = vector.load %arg12[%c0_26, %c0_27] : memref<128x256xbf16, #tpu.memory_space<vmem>>, vector<128x256xbf16>
    %cst_28 = arith.constant dense<0.000000e+00> : vector<128x256xf32>
    %36 = tpu.matmul %34, %35, %cst_28 {dimension_numbers = #tpu.dot_dimension_numbers<[1], [0], [0], [1], [0, 0, 1, 1], [], []>} : vector<128x128xbf16>, vector<128x256xbf16>, vector<128x256xf32> -> vector<128x256xf32>
    %c0_29 = arith.constant 0 : index
    %c0_30 = arith.constant 0 : index
    %37 = vector.load %arg13[%c0_29, %c0_30] : memref<1x256xf32, #tpu.memory_space<vmem>>, vector<1x256xf32>
    %38 = vector.broadcast %37 : vector<1x256xf32> to vector<128x256xf32>
    %39 = arith.addf %36, %38 : vector<128x256xf32>
    %40 = vector.extract_strided_slice %39 {offsets = [0, 0], sizes = [128, 128], strides = [1, 1]} : vector<128x256xf32> to vector<128x128xf32>
    %41 = vector.extract_strided_slice %39 {offsets = [0, 128], sizes = [128, 128], strides = [1, 1]} : vector<128x256xf32> to vector<128x128xf32>
    %42 = arith.subf %0, %40 : vector<128x128xf32>
    %cst_31 = arith.constant 0.000000e+00 : f32
    %43 = vector.broadcast %cst_31 : f32 to vector<128x128xf32>
    %44 = arith.subf %43, %41 : vector<128x128xf32>
    %45 = math.exp %44 : vector<128x128xf32>
    %46 = arith.mulf %42, %45 : vector<128x128xf32>
    %47 = arith.mulf %46, %46 : vector<128x128xf32>
    %cst_32 = arith.constant -5.000000e-01 : f32
    %48 = vector.broadcast %cst_32 : f32 to vector<128x128xf32>
    %49 = arith.mulf %48, %47 : vector<128x128xf32>
    %50 = arith.subf %49, %41 : vector<128x128xf32>
    %51 = tpu.transpose %50, [1, 0] : vector<128x128xf32> -> vector<128x128xf32>
    %cst_33 = arith.constant dense<0.000000e+00> : vector<128xf32>
    %52 = vector.multi_reduction <add>, %51, %cst_33 [0] : vector<128x128xf32> to vector<128xf32>
    %53 = vector.shape_cast %52 : vector<128xf32> to vector<1x128xf32>
    %cst_34 = arith.constant -11.0272627 : f32
    %54 = vector.broadcast %cst_34 : f32 to vector<1x128xf32>
    %55 = arith.addf %53, %54 : vector<1x128xf32>
    %56 = vector.shape_cast %55 : vector<1x128xf32> to vector<1x1x128xf32>
    %c0_35 = arith.constant 0 : index
    %c0_36 = arith.constant 0 : index
    %c0_37 = arith.constant 0 : index
    %57 = vector.load %arg14[%c0_35, %c0_36, %c0_37] : memref<1x1x128xf32, #tpu.memory_space<vmem>>, vector<1x1x128xf32>
    tpu.vector_store %arg14[%c0_35, %c0_36, %c0_37], %56 {strides = array<i32>} : memref<1x1x128xf32, #tpu.memory_space<vmem>>, vector<1x1x128xf32>,
    return
  }
  func.func @transform_0(%arg0: i32) -> (i32, i32) {
    %c0_i32 = arith.constant 0 : i32
    %c0_i32_0 = arith.constant 0 : i32
    return %arg0, %c0_i32 : i32, i32
  }
  func.func @transform_1(%arg0: i32) -> (i32, i32) {
    %c0_i32 = arith.constant 0 : i32
    %c0_i32_0 = arith.constant 0 : i32
    return %arg0, %c0_i32 : i32, i32
  }
  func.func @transform_2(%arg0: i32) -> (i32, i32) {
    %c0_i32 = arith.constant 0 : i32
    %c0_i32_0 = arith.constant 0 : i32
    return %arg0, %c0_i32 : i32, i32
  }
  func.func @transform_3(%arg0: i32) -> (i32, i32) {
    %c0_i32 = arith.constant 0 : i32
    %c0_i32_0 = arith.constant 0 : i32
    %c0_i32_1 = arith.constant 0 : i32
    return %c0_i32, %c0_i32_0 : i32, i32
  }
  func.func @transform_4(%arg0: i32) -> (i32, i32) {
    %c0_i32 = arith.constant 0 : i32
    %c0_i32_0 = arith.constant 0 : i32
    %c0_i32_1 = arith.constant 0 : i32
    return %c0_i32, %c0_i32_0 : i32, i32
  }
  func.func @transform_5(%arg0: i32) -> (i32, i32) {
    %c0_i32 = arith.constant 0 : i32
    %c0_i32_0 = arith.constant 0 : i32
    %c0_i32_1 = arith.constant 0 : i32
    return %c0_i32, %c0_i32_0 : i32, i32
  }
  func.func @transform_6(%arg0: i32) -> (i32, i32) {
    %c0_i32 = arith.constant 0 : i32
    %c0_i32_0 = arith.constant 0 : i32
    %c0_i32_1 = arith.constant 0 : i32
    return %c0_i32, %c0_i32_0 : i32, i32
  }
  func.func @transform_7(%arg0: i32) -> (i32, i32) {
    %c0_i32 = arith.constant 0 : i32
    %c0_i32_0 = arith.constant 0 : i32
    %c0_i32_1 = arith.constant 0 : i32
    return %c0_i32, %c0_i32_0 : i32, i32
  }
  func.func @transform_8(%arg0: i32) -> (i32, i32) {
    %c0_i32 = arith.constant 0 : i32
    %c0_i32_0 = arith.constant 0 : i32
    %c0_i32_1 = arith.constant 0 : i32
    return %c0_i32, %c0_i32_0 : i32, i32
  }
  func.func @transform_9(%arg0: i32) -> (i32, i32) {
    %c0_i32 = arith.constant 0 : i32
    %c0_i32_0 = arith.constant 0 : i32
    %c0_i32_1 = arith.constant 0 : i32
    return %c0_i32, %c0_i32_0 : i32, i32
  }
  func.func @transform_10(%arg0: i32) -> (i32, i32) {
    %c0_i32 = arith.constant 0 : i32
    %c0_i32_0 = arith.constant 0 : i32
    %c0_i32_1 = arith.constant 0 : i32
    return %c0_i32, %c0_i32_0 : i32, i32
  }
  func.func @transform_11(%arg0: i32) -> (i32, i32) {
    %c0_i32 = arith.constant 0 : i32
    %c0_i32_0 = arith.constant 0 : i32
    %c0_i32_1 = arith.constant 0 : i32
    return %c0_i32, %c0_i32_0 : i32, i32
  }
  func.func @transform_12(%arg0: i32) -> (i32, i32) {
    %c0_i32 = arith.constant 0 : i32
    %c0_i32_0 = arith.constant 0 : i32
    %c0_i32_1 = arith.constant 0 : i32
    return %c0_i32, %c0_i32_0 : i32, i32
  }
  func.func @transform_13(%arg0: i32) -> (i32, i32, i32) {
    %c0_i32 = arith.constant 0 : i32
    %c0_i32_0 = arith.constant 0 : i32
    %c0_i32_1 = arith.constant 0 : i32
    return %arg0, %c0_i32, %c0_i32_0 : i32, i32, i32
  }
}

</mosaic_0001>

<bundles_post_ra>
// kernel: mafnpe_forward.1
= control target key start
LH: loop header
LB: loop body
LE: loop exit
PB: predicated region body
PF: predicated region fallthrough
CT: control target
= control target key end

     0   :  { %v1724_v1 = vmov 0   ;;  %s2299_s3 = inlined_call_operand.vmem [shape: bf16[128,128], index: 3, kind: input, shape index: {}]   ;;  %s2300_s1 = inlined_call_operand.vmem [shape: f32[128,128], index: 1, kind: input, shape index: {}]   ;;  %s2301_s2 = inlined_call_operand.vmem [shape: f32[128,1], index: 2, kind: input, shape index: {}]   ;;  %s2302_s6 = inlined_call_operand.vmem [shape: bf16[128,128], index: 6, kind: input, shape index: {}]   ;;  %s2303_s9 = inlined_call_operand.vmem [shape: bf16[128,128], index: 9, kind: input, shape index: {}]   ;;  %s2304_s4 = inlined_call_operand.vmem [shape: f32[1,128], index: 4, kind: input, shape index: {}]   ;;  %s2305_s5 = inlined_call_operand.vmem [shape: f32[1,128], index: 5, kind: input, shape index: {}]   ;;  %s2306_s8 = inlined_call_operand.vmem [shape: bf16[128,128], index: 8, kind: input, shape index: {}]   ;;  %s2307_s11 = inlined_call_operand.vmem [shape: bf16[128,256], index: 11, kind: input, shape index: {}]   ;;  %s2308_s7 = inlined_call_operand.vmem [shape: f32[1,128], index: 7, kind: input, shape index: {}]   ;;  %s2309_s0 = inlined_call_operand.vmem [shape: f32[128,128], index: 0, kind: input, shape index: {}]   ;;  %s2310_s10 = inlined_call_operand.vmem [shape: f32[1,128], index: 10, kind: input, shape index: {}]   ;;  %s2311_s12 = inlined_call_operand.vmem [shape: f32[1,256], index: 12, kind: input, shape index: {}]   ;;  %s2312_s13 = inlined_call_operand.vmem [shape: f32[1,1,128], index: 13, kind: output, shape index: {}]  }
   0x1   :  { %v1636_v0 = vld [vmem:[%s2299_s3] sm:$0xff]   ;;  %1634 = vset.pattern.permute.xlu0 %v1724_v1  ;;  %1635 = vset.pattern.permute.xlu1 %v1724_v1  ;;  %v1637_v2 = vld [vmem:[%s2299_s3 + $0x8] sm:$0xff]   ;;  %v1638_v3 = vld [vmem:[%s2299_s3 + $0x10] sm:$0xff]  }
   0x2   :  { %1489 = vmatprep.subr.bf16.mxu0 %v1636_v0  ;;  %v1639_v4 = vld [vmem:[%s2299_s3 + $0x18] sm:$0xff]   ;;  %v61_v5 = vld [vmem:[%s2300_s1] sm:$0xff]  ;;  %v62_v6 = vld [vmem:[%s2300_s1 + $0x8] sm:$0xff] }
   0x3   :  { %1490 = vmatpush3.bf16.msra.mxu0 %v1636_v0  ;;  %v93_v7 = vpack.c.bf16 %v62_v6, %v61_v5  ;;  %v1640_v8 = vld [vmem:[%s2299_s3 + $0x20] sm:$0xff]   ;;  %v79_v10 = vld [vmem:[%s2301_s2 + $0x10] sm:$0xff]  ;;  %v78_v11 = vld [vmem:[%s2301_s2 + $0x8] sm:$0xff] }
   0x4   :  { %1491 = vmatprep.subr.bf16.mxu0 %v1637_v2  ;;  %v77_v9 = vld [vmem:[%s2301_s2] sm:$0xff]  ;;  %130 = vperm.xlu1 %1635, %v79_v10   ;;  %v80_v12 = vld [vmem:[%s2301_s2 + $0x18] sm:$0xff]  ;;  %v1641_v13 = vld [vmem:[%s2299_s3 + $0x28] sm:$0xff]  }
   0x5   :  { %1505 = vmatprep.mubr.bf16.mxu0 %v93_v7  ;;  %120 = vperm.xlu0 %1634, %v77_v9   ;;  %v81_v14 = vld [vmem:[%s2301_s2 + $0x20] sm:$0xff]  ;;  %v82_v15 = vld [vmem:[%s2301_s2 + $0x28] sm:$0xff]  ;;  %v1642_v16 = vld [vmem:[%s2299_s3 + $0x30] sm:$0xff]  }
   0x6   :  { %v1643_v17 = vld [vmem:[%s2299_s3 + $0x38] sm:$0xff]   ;;  %v83_v18 = vld [vmem:[%s2301_s2 + $0x30] sm:$0xff]  ;;  %v1644_v20 = vld [vmem:[%s2302_s6] sm:$0xff]  }
   0x7   :  { %1492 = vmatpush3.bf16.msra.mxu0 %v1637_v2  ;;  %v84_v19 = vld [vmem:[%s2301_s2 + $0x38] sm:$0xff]  ;;  %v63_v21 = vld [vmem:[%s2300_s1 + $0x10] sm:$0xff]  ;;  %v85_v23 = vld [vmem:[%s2301_s2 + $0x40] sm:$0xff]  ;;  %1521 = vmatprep.subr.bf16.mxu1 %v1644_v20 }
   0x8   :  { %1493 = vmatprep.subr.bf16.mxu0 %v1638_v3  ;;  %135 = vperm.xlu1 %1635, %v80_v12   ;;  %v64_v22 = vld [vmem:[%s2300_s1 + $0x18] sm:$0xff]  ;;  %v86_v24 = vld [vmem:[%s2301_s2 + $0x48] sm:$0xff]  ;;  %v65_v25 = vld [vmem:[%s2300_s1 + $0x20] sm:$0xff] }
   0x9   :  { %125 = vperm.xlu0 %1634, %v78_v11   ;;  %v66_v26 = vld [vmem:[%s2300_s1 + $0x28] sm:$0xff]  ;;  %1522 = vmatpush3.bf16.msra.mxu1 %v1644_v20  ;;  %v94_v28 = vpack.c.bf16 %v64_v22, %v63_v21  ;;  %v1646_v29 = vld [vmem:[%s2302_s6 + $0x10] sm:$0xff]   ;;  %v88_v32 = vld [vmem:[%s2301_s2 + $0x58] sm:$0xff] }
   0xa   :  { %v1645_v27 = vld [vmem:[%s2302_s6 + $0x8] sm:$0xff]   ;;  %v95_v30 = vpack.c.bf16 %v66_v26, %v65_v25  ;;  %v87_v31 = vld [vmem:[%s2301_s2 + $0x50] sm:$0xff]  ;;  %v68_v34 = vld [vmem:[%s2300_s1 + $0x38] sm:$0xff] }
   0xb   :  { %1494 = vmatpush3.bf16.msra.mxu0 %v1638_v3  ;;  %1523 = vmatprep.subr.bf16.mxu1 %v1645_v27  ;;  %v67_v33 = vld [vmem:[%s2300_s1 + $0x30] sm:$0xff]  ;;  %v89_v35 = vld [vmem:[%s2301_s2 + $0x60] sm:$0xff]  ;;  %v1647_v36 = vld [vmem:[%s2302_s6 + $0x18] sm:$0xff]  }
   0xc   :  { %1495 = vmatprep.subr.bf16.mxu0 %v1639_v4  ;;  %145 = vperm.xlu1 %1635, %v82_v15   ;;  %v69_v37 = vld [vmem:[%s2300_s1 + $0x40] sm:$0xff]  ;;  %v70_v38 = vld [vmem:[%s2300_s1 + $0x48] sm:$0xff]  ;;  %v96_v40 = vpack.c.bf16 %v68_v34, %v67_v33  ;;  %v91_v42 = vld [vmem:[%s2301_s2 + $0x70] sm:$0xff] }
   0xd   :  { %140 = vperm.xlu0 %1634, %v81_v14   ;;  %1524 = vmatpush3.bf16.msra.mxu1 %v1645_v27  ;;  %v90_v39 = vld [vmem:[%s2301_s2 + $0x68] sm:$0xff]  ;;  %v97_v41 = vpack.c.bf16 %v70_v38, %v69_v37  ;;  %v1648_v43 = vld [vmem:[%s2302_s6 + $0x20] sm:$0xff]   ;;  %v92_v44 = vld [vmem:[%s2301_s2 + $0x78] sm:$0xff] }
   0xe   :  { %1525 = vmatprep.subr.bf16.mxu1 %v1646_v29  ;;  %v71_v45 = vld [vmem:[%s2300_s1 + $0x50] sm:$0xff]  ;;  %v72_v46 = vld [vmem:[%s2300_s1 + $0x58] sm:$0xff]  ;;  %v73_v47 = vld [vmem:[%s2300_s1 + $0x60] sm:$0xff] }
   0xf   :  { %1496 = vmatpush3.bf16.msra.mxu0 %v1639_v4  ;;  %v74_v48 = vld [vmem:[%s2300_s1 + $0x68] sm:$0xff]  ;;  %v98_v49 = vpack.c.bf16 %v72_v46, %v71_v45  ;;  %v75_v51 = vld [vmem:[%s2300_s1 + $0x70] sm:$0xff]  ;;  %v76_v52 = vld [vmem:[%s2300_s1 + $0x78] sm:$0xff] }
  0x10   :  { %1497 = vmatprep.subr.bf16.mxu0 %v1640_v8  ;;  %155 = vperm.xlu1 %1635, %v84_v19   ;;  %v99_v50 = vpack.c.bf16 %v74_v48, %v73_v47  ;;  %v100_v53 = vpack.c.bf16 %v76_v52, %v75_v51  ;;  %v1649_v54 = vld [vmem:[%s2302_s6 + $0x28] sm:$0xff]   ;;  %v1650_v55 = vld [vmem:[%s2302_s6 + $0x30] sm:$0xff]   ;;  %v1651_v56 = vld [vmem:[%s2302_s6 + $0x38] sm:$0xff]  }
  0x11   :  { %150 = vperm.xlu0 %1634, %v83_v18   ;;  %1526 = vmatpush3.bf16.msra.mxu1 %v1646_v29  ;;  %v1652_v57 = vld [vmem:[%s2303_s9] sm:$0xff]   ;;  %v1653_v58 = vld [vmem:[%s2303_s9 + $0x8] sm:$0xff]   ;;  %v1654_v59 = vld [vmem:[%s2303_s9 + $0x10] sm:$0xff]  }
  0x12   :  { %1527 = vmatprep.subr.bf16.mxu1 %v1647_v36  ;;  %v1655_v60 = vld [vmem:[%s2303_s9 + $0x18] sm:$0xff]   ;;  %v1656_v61 = vld [vmem:[%s2303_s9 + $0x20] sm:$0xff]   ;;  %v1657_v62 = vld [vmem:[%s2303_s9 + $0x28] sm:$0xff]  }
  0x13   :  { %1498 = vmatpush3.bf16.msra.mxu0 %v1640_v8  ;;  %v1962_v6 = vld [vmem:[%s2304_s4] ss:$0 sm:$0xff] }
  0x14   :  { %1499 = vmatprep.subr.bf16.mxu0 %v1641_v13  ;;  %165 = vperm.xlu1 %1635, %v86_v24   ;;  %v1969_v12 = vld [vmem:[%s2305_s5] ss:$0 sm:$0xff] }
  0x15   :  { %160 = vperm.xlu0 %1634, %v85_v23   ;;  %1528 = vmatpush3.bf16.msra.mxu1 %v1647_v36 }
  0x16   :  { %1529 = vmatprep.subr.bf16.mxu1 %v1648_v43 }
  0x17   :  { %1500 = vmatpush3.bf16.msra.mxu0 %v1641_v13 }
  0x18   :  { %1501 = vmatprep.subr.bf16.mxu0 %v1642_v16  ;;  %175 = vperm.xlu1 %1635, %v88_v32  }
  0x19   :  { %170 = vperm.xlu0 %1634, %v87_v31   ;;  %1530 = vmatpush3.bf16.msra.mxu1 %v1648_v43 }
  0x1a   :  { %1531 = vmatprep.subr.bf16.mxu1 %v1649_v54 }
  0x1b   :  { %1502 = vmatpush3.bf16.msra.mxu0 %v1642_v16 }
  0x1c   :  { %1503 = vmatprep.subr.bf16.mxu0 %v1643_v17  ;;  %185 = vperm.xlu1 %1635, %v90_v39  }
  0x1d   :  { %180 = vperm.xlu0 %1634, %v89_v35   ;;  %1532 = vmatpush3.bf16.msra.mxu1 %v1649_v54 }
  0x1e   :  { %1533 = vmatprep.subr.bf16.mxu1 %v1650_v55 }
  0x1f   :  { %1504 = vmatpush3.bf16.msra.mxu0 %v1643_v17 }
  0x20   :  { %195 = vperm.xlu1 %1635, %v92_v44   ;;  %1553 = vmatprep.subr.bf16.mxu0 %v1652_v57 }
  0x21   :  { %190 = vperm.xlu0 %1634, %v91_v42   ;;  %1534 = vmatpush3.bf16.msra.mxu1 %v1650_v55 }
  0x22   :  { %1506 = vmatmul.mubr.bf16.vlgmr.msra.gmra.mrb[0].mxu0 %v94_v28  ;;  %1535 = vmatprep.subr.bf16.mxu1 %v1651_v56 }
  0x23   :  { %1509 = vmatprep.mubr.bf16.mxu0 %v95_v30  ;;  %1554 = vmatpush3.bf16.msra.mxu0 %v1652_v57 }
  0x24   :  { %1555 = vmatprep.subr.bf16.mxu0 %v1653_v58 }
  0x25   :  { %1536 = vmatpush3.bf16.msra.mxu1 %v1651_v56 }
  0x27   :  { %1556 = vmatpush3.bf16.msra.mxu0 %v1653_v58 }
  0x28   :  { %1557 = vmatprep.subr.bf16.mxu0 %v1654_v59 }
  0x2a   :  { %1510 = vmatmul.mubr.bf16.gmra.mrb[4].mxu0 %v96_v40 }
  0x2b   :  { %1513 = vmatprep.mubr.bf16.mxu0 %v97_v41  ;;  %1558 = vmatpush3.bf16.msra.mxu0 %v1654_v59 }
  0x2c   :  { %1559 = vmatprep.subr.bf16.mxu0 %v1655_v60 }
  0x2f   :  { %1560 = vmatpush3.bf16.msra.mxu0 %v1655_v60 }
  0x30   :  { %1561 = vmatprep.subr.bf16.mxu0 %v1656_v61 }
  0x32   :  { %1514 = vmatmul.mubr.bf16.gmra.mrb[8].mxu0 %v98_v49 }
  0x33   :  { %1517 = vmatprep.mubr.bf16.mxu0 %v99_v50  ;;  %1562 = vmatpush3.bf16.msra.mxu0 %v1656_v61 }
  0x34   :  { %1563 = vmatprep.subr.bf16.mxu0 %v1657_v62 }
  0x37   :  { %1564 = vmatpush3.bf16.msra.mxu0 %v1657_v62 }
  0x3a   :  { %1518 = vmatmul.mubr.bf16.gmra.mrb[12].mxu0 %v100_v53 }
  0x83   :  { %v131_v0 = vpop.permute.xlu1 %130 }
  0x84   :  { %v121_v63 = vpop.permute.xlu0 %120  ;;  %v206_v8 = vmul.f32 %v1962_v6, %v131_v0 }
  0x85   :  { %v204_v10 = vmul.f32 %v1962_v6, %v121_v63 }
  0x87   :  { %v136_v3 = vpop.permute.xlu1 %135 }
  0x88   :  { %v126_v2 = vpop.permute.xlu0 %125  ;;  %v207_v13 = vmul.f32 %v1962_v6, %v136_v3 }
  0x89   :  { %v205_v16 = vmul.f32 %v1962_v6, %v126_v2 }
  0x8b   :  { %v146_v5 = vpop.permute.xlu1 %145 }
  0x8c   :  { %v141_v4 = vpop.permute.xlu0 %140  ;;  %v209_v40 = vmul.f32 %v1962_v6, %v146_v5 }
  0x8d   :  { %v208_v31 = vmul.f32 %v1962_v6, %v141_v4 }
  0x8f   :  { %v156_v9 = vpop.permute.xlu1 %155 }
  0x90   :  { %v151_v7 = vpop.permute.xlu0 %150  ;;  %v211_v36 = vmul.f32 %v1962_v6, %v156_v9 }
  0x91   :  { %v210_v28 = vmul.f32 %v1962_v6, %v151_v7 }
  0x93   :  { %v166_v23 = vpop.permute.xlu1 %165 }
  0x94   :  { %v161_v17 = vpop.permute.xlu0 %160  ;;  %v213_v2 = vmul.f32 %v1962_v6, %v166_v23 }
  0x95   :  { %v212_v56 = vmul.f32 %v1962_v6, %v161_v17 }
  0x97   :  { %v176_v41 = vpop.permute.xlu1 %175 }
  0x98   :  { %v171_v32 = vpop.permute.xlu0 %170  ;;  %v215_v61 = vmul.f32 %v1962_v6, %v176_v41 }
  0x99   :  { %v214_v53 = vmul.f32 %v1962_v6, %v171_v32 }
  0x9b   :  { %v186_v57 = vpop.permute.xlu1 %185 }
  0x9c   :  { %v181_v51 = vpop.permute.xlu0 %180 }
  0xf5   :  { %v1507_v11 = vpop.f32.mrb[0].mxu0 }
  0xf6   :  { %v311_v14 = vadd.f32 %v1507_v11, %v206_v8  ;;  %v302_v15 = vpop.f32.mrb[1].mxu0 }
  0xf7   :  { %v303_v18 = vadd.f32 %v302_v15, %v204_v10  ;;  %v1508_v19 = vpop.f32.mrb[2].mxu0  ;;  %v191_v10 = vpop.permute.xlu0 %190 }
  0xf8   :  { %v374_v20 = vadd.f32 %v1969_v12, %v311_v14  ;;  %v314_v21 = vadd.f32 %v1508_v19, %v207_v13  ;;  %v305_v22 = vpop.f32.mrb[3].mxu0  ;;  %v196_v15 = vpop.permute.xlu1 %195  ;;  %v218_v17 = vmul.f32 %v1962_v6, %v191_v10 }
  0xf9   :  { %v306_v24 = vadd.f32 %v305_v22, %v205_v16  ;;  %v372_v25 = vadd.f32 %v1969_v12, %v303_v18 }
  0xfa   :  { %v375_v26 = vadd.f32 %v1969_v12, %v314_v21  ;;  %v390_v29 = vmax.f32 %v374_v20, 0.0  ;;  %v216_v20 = vmul.f32 %v1962_v6, %v181_v51  ;;  %v1674_v51 = vld [vmem:[%s2307_s11 + $0x20] ss:$8 sps:$4 sm:$0xff]  }
  0xfb   :  { %v373_v27 = vadd.f32 %v1969_v12, %v306_v24  ;;  %v388_v34 = vmax.f32 %v372_v25, 0.0  ;;  %v219_v24 = vmul.f32 %v1962_v6, %v196_v15  ;;  %v1662_v15 = vld [vmem:[%s2306_s8 + $0x10] sm:$0xff]  }
  0xfc   :  { %v391_v30 = vmax.f32 %v375_v26, 0.0 }
  0xfd   :  { %v1511_v33 = vpop.f32.mrb[4].mxu0  ;;  %v389_v35 = vmax.f32 %v373_v27, 0.0 }
  0xfe   :  { %v327_v37 = vadd.f32 %v1511_v33, %v210_v28  ;;  %v318_v38 = vpop.f32.mrb[5].mxu0  ;;  %v405_v39 = vpack.c.bf16 %v391_v30, %v390_v29  ;;  %v217_v28 = vmul.f32 %v1962_v6, %v186_v57  ;;  %v1683_v57 = vld [vmem:[%s2307_s11 + $0x50] ss:$8 sps:$4 sm:$0xff]  }
  0xff   :  { %v319_v42 = vadd.f32 %v318_v38, %v208_v31  ;;  %v1512_v43 = vpop.f32.mrb[6].mxu0  ;;  %v404_v44 = vpack.c.bf16 %v389_v35, %v388_v34 }
 0x100   :  { %v378_v45 = vadd.f32 %v1969_v12, %v327_v37  ;;  %v330_v46 = vadd.f32 %v1512_v43, %v211_v36  ;;  %v321_v47 = vpop.f32.mrb[7].mxu0 }
 0x101   :  { %v376_v48 = vadd.f32 %v1969_v12, %v319_v42  ;;  %v322_v49 = vadd.f32 %v321_v47, %v209_v40  ;;  %1537 = vmatprep.mubr.bf16.mxu1 %v404_v44  ;;  %v1658_v44 = vld [vmem:[%s2303_s9 + $0x30] sm:$0xff]   ;;  %v1670_v47 = vld [vmem:[%s2307_s11 + $0x4] ss:$8 sps:$4 sm:$0xff]  }
 0x102   :  { %v379_v50 = vadd.f32 %v1969_v12, %v330_v46  ;;  %1538 = vmatmul.mubr.bf16.vlgmr.msra.gmra.mrb[0].mxu1 %v405_v39  ;;  %v394_v54 = vmax.f32 %v378_v45, 0.0  ;;  %1565 = vmatprep.subr.bf16.mxu0 %v1658_v44  ;;  %v1660_v45 = vld [vmem:[%s2306_s8] sm:$0xff]  }
 0x103   :  { %v377_v52 = vadd.f32 %v1969_v12, %v322_v49  ;;  %v392_v58 = vmax.f32 %v376_v48, 0.0  ;;  %1566 = vmatpush3.bf16.msra.mxu0 %v1658_v44  ;;  %v1668_v46 = vld [vmem:[%s2307_s11] ss:$8 sps:$4 sm:$0xff]   ;;  %v1673_v48 = vld [vmem:[%s2307_s11 + $0x14] ss:$8 sps:$4 sm:$0xff]   ;;  %1073 = vmatprep.subr.bf16.mxu1 %v1670_v47 }
 0x104   :  { %v395_v55 = vmax.f32 %v379_v50, 0.0  ;;  %1074 = vmatpush1.bf16.msra.mxu1 %v1668_v46  ;;  %v1671_v49 = vld [vmem:[%s2307_s11 + $0x10] ss:$8 sps:$4 sm:$0xff]   ;;  %v1676_v50 = vld [vmem:[%s2307_s11 + $0x24] ss:$8 sps:$4 sm:$0xff]  }
 0x105   :  { %v393_v59 = vmax.f32 %v377_v52, 0.0  ;;  %v1515_v60 = vpop.f32.mrb[8].mxu0  ;;  %1075 = vmatprep.subr.bf16.mxu1 %v1673_v48  ;;  %v1679_v52 = vld [vmem:[%s2307_s11 + $0x34] ss:$8 sps:$4 sm:$0xff]   ;;  %v2096_v48 = vld [vmem:[%s2309_s0 + $0x20] sm:$0xff] }
 0x106   :  { %v343_v62 = vadd.f32 %v1515_v60, %v214_v53  ;;  %v334_v63 = vpop.f32.mrb[9].mxu0  ;;  %v407_v0 = vpack.c.bf16 %v395_v55, %v394_v54  ;;  %v1677_v53 = vld [vmem:[%s2307_s11 + $0x30] ss:$8 sps:$4 sm:$0xff]   ;;  %v1682_v54 = vld [vmem:[%s2307_s11 + $0x44] ss:$8 sps:$4 sm:$0xff]  }
 0x107   :  { %v335_v3 = vadd.f32 %v334_v63, %v212_v56  ;;  %v1516_v4 = vpop.f32.mrb[10].mxu0  ;;  %v406_v5 = vpack.c.bf16 %v393_v59, %v392_v58  ;;  %v1680_v55 = vld [vmem:[%s2307_s11 + $0x40] ss:$8 sps:$4 sm:$0xff]   ;;  %v1685_v56 = vld [vmem:[%s2307_s11 + $0x54] ss:$8 sps:$4 sm:$0xff]  }
 0x108   :  { %v382_v7 = vadd.f32 %v1969_v12, %v343_v62  ;;  %v346_v8 = vadd.f32 %v1516_v4, %v215_v61  ;;  %v337_v9 = vpop.f32.mrb[11].mxu0  ;;  %1076 = vmatpush1.bf16.msra.mxu1 %v1671_v49  ;;  %v1383_v59 = vld [vmem:[%s2308_s7] ss:$0 sm:$0xff]  ;;  %v2086_v46 = vld [vmem:[%s2309_s0 + $0x10] sm:$0xff]  ;;  %v2091_v47 = vld [vmem:[%s2309_s0 + $0x18] sm:$0xff] }
 0x109   :  { %v380_v11 = vadd.f32 %v1969_v12, %v335_v3  ;;  %v338_v13 = vadd.f32 %v337_v9, %v213_v2  ;;  %1541 = vmatprep.mubr.bf16.mxu1 %v406_v5  ;;  %1077 = vmatprep.subr.bf16.mxu1 %v1676_v50  ;;  %v2101_v49 = vld [vmem:[%s2309_s0 + $0x28] sm:$0xff]  ;;  %v581_v50 = vpack.c.bf16 %v2091_v47, %v2086_v46 }
 0x10a   :  { %v383_v14 = vadd.f32 %v1969_v12, %v346_v8  ;;  %1542 = vmatmul.mubr.bf16.gmra.mrb[4].mxu1 %v407_v0  ;;  %v398_v18 = vmax.f32 %v382_v7, 0.0  ;;  %v1661_v7 = vld [vmem:[%s2306_s8 + $0x8] sm:$0xff]  }
 0x10b   :  { %v381_v16 = vadd.f32 %v1969_v12, %v338_v13  ;;  %v396_v21 = vmax.f32 %v380_v11, 0.0 }
 0x10c   :  { %v399_v19 = vmax.f32 %v383_v14, 0.0  ;;  %1078 = vmatpush1.bf16.msra.mxu1 %v1674_v51  ;;  %v582_v51 = vpack.c.bf16 %v2101_v49, %v2096_v48 }
 0x10d   :  { %v397_v22 = vmax.f32 %v381_v16, 0.0  ;;  %v1519_v23 = vpop.f32.mrb[12].mxu0  ;;  %1079 = vmatprep.subr.bf16.mxu1 %v1679_v52  ;;  %v2110_v52 = vld [vmem:[%s2309_s0 + $0x30] sm:$0xff] }
 0x10e   :  { %v359_v25 = vadd.f32 %v1519_v23, %v218_v17  ;;  %v350_v26 = vpop.f32.mrb[13].mxu0  ;;  %v409_v27 = vpack.c.bf16 %v399_v19, %v398_v18 }
 0x10f   :  { %v351_v29 = vadd.f32 %v350_v26, %v216_v20  ;;  %v1520_v30 = vpop.f32.mrb[14].mxu0  ;;  %v408_v31 = vpack.c.bf16 %v397_v22, %v396_v21  ;;  %v1663_v20 = vld [vmem:[%s2306_s8 + $0x18] sm:$0xff]  }
 0x110   :  { %v386_v32 = vadd.f32 %v1969_v12, %v359_v25  ;;  %v362_v33 = vadd.f32 %v1520_v30, %v219_v24  ;;  %v353_v34 = vpop.f32.mrb[15].mxu0  ;;  %1080 = vmatpush1.bf16.msra.mxu1 %v1677_v53  ;;  %v2115_v53 = vld [vmem:[%s2309_s0 + $0x38] sm:$0xff] }
 0x111   :  { %v384_v35 = vadd.f32 %v1969_v12, %v351_v29  ;;  %v354_v36 = vadd.f32 %v353_v34, %v217_v28  ;;  %1545 = vmatprep.mubr.bf16.mxu1 %v408_v31  ;;  %1081 = vmatprep.subr.bf16.mxu1 %v1682_v54  ;;  %v2120_v54 = vld [vmem:[%s2309_s0 + $0x40] sm:$0xff] }
 0x112   :  { %v387_v37 = vadd.f32 %v1969_v12, %v362_v33  ;;  %1546 = vmatmul.mubr.bf16.gmra.mrb[8].mxu1 %v409_v27  ;;  %v402_v39 = vmax.f32 %v386_v32, 0.0  ;;  %v1664_v27 = vld [vmem:[%s2306_s8 + $0x20] sm:$0xff]   ;;  %v1665_v32 = vld [vmem:[%s2306_s8 + $0x28] sm:$0xff]  }
 0x113   :  { %v385_v38 = vadd.f32 %v1969_v12, %v354_v36  ;;  %v400_v41 = vmax.f32 %v384_v35, 0.0  ;;  %v1659_v12 = vld [vmem:[%s2303_s9 + $0x38] sm:$0xff]  }
 0x114   :  { %v403_v40 = vmax.f32 %v387_v37, 0.0  ;;  %1567 = vmatprep.subr.bf16.mxu0 %v1659_v12  ;;  %1082 = vmatpush1.bf16.msra.mxu1 %v1680_v55  ;;  %v2125_v55 = vld [vmem:[%s2309_s0 + $0x48] sm:$0xff] }
 0x115   :  { %v401_v6 = vmax.f32 %v385_v38, 0.0  ;;  %1568 = vmatpush3.bf16.msra.mxu0 %v1659_v12  ;;  %1083 = vmatprep.subr.bf16.mxu1 %v1685_v56  ;;  %v583_v56 = vpack.c.bf16 %v2115_v53, %v2110_v52 }
 0x116   :  { %v411_v42 = vpack.c.bf16 %v403_v40, %v402_v39  ;;  %1585 = vmatprep.subr.bf16.mxu0 %v1660_v45  ;;  %v1666_v39 = vld [vmem:[%s2306_s8 + $0x30] sm:$0xff]   ;;  %v2071_v40 = vld [vmem:[%s2309_s0] sm:$0xff] }
 0x117   :  { %v410_v43 = vpack.c.bf16 %v401_v6, %v400_v41  ;;  %v2076_v41 = vld [vmem:[%s2309_s0 + $0x8] sm:$0xff] }
 0x118   :  { %1084 = vmatpush1.bf16.msra.mxu1 %v1683_v57  ;;  %v580_v12 = vpack.c.bf16 %v2076_v41, %v2071_v40  ;;  %v584_v57 = vpack.c.bf16 %v2125_v55, %v2120_v54 }
 0x119   :  { %1549 = vmatprep.mubr.bf16.mxu1 %v410_v43 }
 0x11a   :  { %1550 = vmatmul.mubr.bf16.gmra.mrb[12].mxu1 %v411_v42 }
 0x11b   :  { %1105 = vmatprep.mubr.bf16.mxu1 %v1724_v1 }
 0x1d5   :  { %v1539_v58 = vpop.f32.mrb[0].mxu1 }
 0x1d6   :  { %v517_v60 = vpop.f32.mrb[1].mxu1  ;;  %v526_v62 = vadd.f32 %v1539_v58, %v1383_v59  ;;  %v2134_v58 = vld [vmem:[%s2309_s0 + $0x50] sm:$0xff] }
 0x1d7   :  { %v1540_v61 = vpop.f32.mrb[2].mxu1  ;;  %v518_v2 = vadd.f32 %v1383_v59, %v517_v60  ;;  %v2144_v60 = vld [vmem:[%s2309_s0 + $0x60] sm:$0xff] }
 0x1d8   :  { %v529_v63 = vadd.f32 %v1540_v61, %v1383_v59  ;;  %v520_v0 = vpop.f32.mrb[3].mxu1  ;;  %v2149_v61 = vld [vmem:[%s2309_s0 + $0x68] sm:$0xff] }
 0x1d9   :  { %v521_v3 = vadd.f32 %v1383_v59, %v520_v0  ;;  %v2158_v0 = vld [vmem:[%s2309_s0 + $0x70] sm:$0xff] }
 0x1da   :  { %v605_v4 = vpack.c.bf16 %v529_v63, %v526_v62  ;;  %v586_v63 = vpack.c.bf16 %v2149_v61, %v2144_v60 }
 0x1db   :  { %v604_v5 = vpack.c.bf16 %v521_v3, %v518_v2  ;;  %v2163_v2 = vld [vmem:[%s2309_s0 + $0x78] sm:$0xff] }
 0x1dc   :  { %v587_v3 = vpack.c.bf16 %v2163_v2, %v2158_v0 }
 0x1dd   :  { %v1543_v8 = vpop.f32.mrb[4].mxu1  ;;  %1569 = vmatprep.mubr.bf16.mxu0 %v604_v5  ;;  %v1686_v5 = vld [vmem:[%s2307_s11 + $0x60] ss:$8 sps:$4 sm:$0xff]  }
 0x1de   :  { %v533_v9 = vpop.f32.mrb[5].mxu1  ;;  %1570 = vmatmul.mubr.bf16.vlgmr.msra.gmra.mrb[16].mxu0 %v605_v4  ;;  %v542_v11 = vadd.f32 %v1543_v8, %v1383_v59  ;;  %v1688_v4 = vld [vmem:[%s2307_s11 + $0x64] ss:$8 sps:$4 sm:$0xff]   ;;  %v1689_v8 = vld [vmem:[%s2307_s11 + $0x70] ss:$8 sps:$4 sm:$0xff]  }
 0x1df   :  { %1586 = vmatpush3.bf16.msra.mxu0 %v1660_v45  ;;  %v1544_v10 = vpop.f32.mrb[6].mxu1  ;;  %v534_v16 = vadd.f32 %v1383_v59, %v533_v9  ;;  %v1667_v45 = vld [vmem:[%s2306_s8 + $0x38] sm:$0xff]   ;;  %1085 = vmatprep.subr.bf16.mxu1 %v1688_v4  ;;  %v1408_v9 = vld [vmem:[%s2310_s10] ss:$0 sm:$0xff] }
 0x1e0   :  { %v545_v13 = vadd.f32 %v1544_v10, %v1383_v59  ;;  %v536_v14 = vpop.f32.mrb[7].mxu1  ;;  %1587 = vmatprep.subr.bf16.mxu0 %v1661_v7  ;;  %1086 = vmatpush1.bf16.msra.mxu1 %v1686_v5 }
 0x1e1   :  { %v537_v17 = vadd.f32 %v1383_v59, %v536_v14 }
 0x1e2   :  { %v607_v18 = vpack.c.bf16 %v545_v13, %v542_v11 }
 0x1e3   :  { %v606_v19 = vpack.c.bf16 %v537_v17, %v534_v16  ;;  %1588 = vmatpush3.bf16.msra.mxu0 %v1661_v7  ;;  %v1691_v7 = vld [vmem:[%s2307_s11 + $0x74] ss:$8 sps:$4 sm:$0xff]  }
 0x1e4   :  { %1589 = vmatprep.subr.bf16.mxu0 %v1662_v15  ;;  %1087 = vmatprep.subr.bf16.mxu1 %v1691_v7 }
 0x1e5   :  { %v1547_v21 = vpop.f32.mrb[8].mxu1  ;;  %1573 = vmatprep.mubr.bf16.mxu0 %v606_v19  ;;  %1088 = vmatpush1.bf16.msra.mxu1 %v1689_v8 }
 0x1e6   :  { %v549_v22 = vpop.f32.mrb[9].mxu1  ;;  %1574 = vmatmul.mubr.bf16.gmra.mrb[20].mxu0 %v607_v18  ;;  %v558_v24 = vadd.f32 %v1547_v21, %v1383_v59 }
 0x1e7   :  { %1590 = vmatpush3.bf16.msra.mxu0 %v1662_v15  ;;  %v1548_v23 = vpop.f32.mrb[10].mxu1  ;;  %v550_v28 = vadd.f32 %v1383_v59, %v549_v22 }
 0x1e8   :  { %v561_v25 = vadd.f32 %v1548_v23, %v1383_v59  ;;  %v552_v26 = vpop.f32.mrb[11].mxu1  ;;  %1591 = vmatprep.subr.bf16.mxu0 %v1663_v20 }
 0x1e9   :  { %v553_v29 = vadd.f32 %v1383_v59, %v552_v26 }
 0x1ea   :  { %v609_v30 = vpack.c.bf16 %v561_v25, %v558_v24 }
 0x1eb   :  { %v608_v31 = vpack.c.bf16 %v553_v29, %v550_v28  ;;  %1592 = vmatpush3.bf16.msra.mxu0 %v1663_v20 }
 0x1ec   :  { %1593 = vmatprep.subr.bf16.mxu0 %v1664_v27 }
 0x1ed   :  { %v1551_v33 = vpop.f32.mrb[12].mxu1  ;;  %1577 = vmatprep.mubr.bf16.mxu0 %v608_v31 }
 0x1ee   :  { %v565_v34 = vpop.f32.mrb[13].mxu1  ;;  %1578 = vmatmul.mubr.bf16.gmra.mrb[24].mxu0 %v609_v30  ;;  %v574_v36 = vadd.f32 %v1551_v33, %v1383_v59 }
 0x1ef   :  { %1594 = vmatpush3.bf16.msra.mxu0 %v1664_v27  ;;  %v1552_v35 = vpop.f32.mrb[14].mxu1  ;;  %v566_v6 = vadd.f32 %v1383_v59, %v565_v34 }
 0x1f0   :  { %v577_v37 = vadd.f32 %v1552_v35, %v1383_v59  ;;  %v568_v38 = vpop.f32.mrb[15].mxu1  ;;  %1595 = vmatprep.subr.bf16.mxu0 %v1665_v32 }
 0x1f1   :  { %v569_v42 = vadd.f32 %v1383_v59, %v568_v38  ;;  %v2139_v59 = vld [vmem:[%s2309_s0 + $0x58] sm:$0xff] }
 0x1f2   :  { %v611_v43 = vpack.c.bf16 %v577_v37, %v574_v36  ;;  %v585_v62 = vpack.c.bf16 %v2139_v59, %v2134_v58 }
 0x1f3   :  { %v610_v44 = vpack.c.bf16 %v569_v42, %v566_v6  ;;  %1596 = vmatpush3.bf16.msra.mxu0 %v1665_v32 }
 0x1f4   :  { %1597 = vmatprep.subr.bf16.mxu0 %v1666_v39 }
 0x1f5   :  { %1581 = vmatprep.mubr.bf16.mxu0 %v610_v44 }
 0x1f6   :  { %1582 = vmatmul.mubr.bf16.gmra.mrb[28].mxu0 %v611_v43 }
 0x1f7   :  { %1598 = vmatpush3.bf16.msra.mxu0 %v1666_v39  ;;  %1601 = vmatprep.mubr.bf16.mxu0 %v580_v12 }
 0x1f8   :  { %1599 = vmatprep.subr.bf16.mxu0 %v1667_v45 }
 0x1fb   :  { %1600 = vmatpush3.bf16.msra.mxu0 %v1667_v45 }
 0x1fe   :  { %1602 = vmatmul.mubr.bf16.vlgmr.msra.gmra.mrb[16].mxu0 %v581_v50 }
 0x1ff   :  { %1605 = vmatprep.mubr.bf16.mxu0 %v582_v51 }
 0x206   :  { %1606 = vmatmul.mubr.bf16.gmra.mrb[20].mxu0 %v583_v56 }
 0x207   :  { %1609 = vmatprep.mubr.bf16.mxu0 %v584_v57 }
 0x20e   :  { %1610 = vmatmul.mubr.bf16.gmra.mrb[24].mxu0 %v585_v62 }
 0x20f   :  { %1613 = vmatprep.mubr.bf16.mxu0 %v586_v63 }
 0x216   :  { %1614 = vmatmul.mubr.bf16.gmra.mrb[28].mxu0 %v587_v3 }
 0x2d1   :  { %v1603_v10 = vpop.f32.mrb[16].mxu0 }
 0x2d2   :  { %v927_v11 = vadd.f32 %v1603_v10, %v1408_v9  ;;  %v855_v13 = vpop.f32.mrb[17].mxu0 }
 0x2d3   :  { %v925_v14 = vadd.f32 %v1408_v9, %v855_v13  ;;  %v1604_v15 = vpop.f32.mrb[18].mxu0 }
 0x2d4   :  { %v928_v16 = vadd.f32 %v1604_v15, %v1408_v9  ;;  %v858_v17 = vpop.f32.mrb[19].mxu0  ;;  %v943_v19 = vmax.f32 %v927_v11, 0.0 }
 0x2d5   :  { %v926_v18 = vadd.f32 %v1408_v9, %v858_v17  ;;  %v941_v21 = vmax.f32 %v925_v14, 0.0 }
 0x2d6   :  { %v944_v20 = vmax.f32 %v928_v16, 0.0 }
 0x2d7   :  { %v942_v22 = vmax.f32 %v926_v18, 0.0 }
 0x2d8   :  { %v958_v23 = vpack.c.bf16 %v944_v20, %v943_v19 }
 0x2d9   :  { %v957_v24 = vpack.c.bf16 %v942_v22, %v941_v21  ;;  %v1607_v25 = vpop.f32.mrb[20].mxu0 }
 0x2da   :  { %v931_v26 = vadd.f32 %v1607_v25, %v1408_v9  ;;  %v871_v27 = vpop.f32.mrb[21].mxu0 }
 0x2db   :  { %v929_v28 = vadd.f32 %v1408_v9, %v871_v27  ;;  %v1608_v29 = vpop.f32.mrb[22].mxu0  ;;  %1106 = vmatmul.mubr.bf16.vlgmr.msra.gmra.mrb[16].mxu1 %v957_v24 }
 0x2dc   :  { %v932_v30 = vadd.f32 %v1608_v29, %v1408_v9  ;;  %v874_v31 = vpop.f32.mrb[23].mxu0  ;;  %1115 = vmatprep.mubr.bf16.mxu1 %v1724_v1  ;;  %v947_v33 = vmax.f32 %v931_v26, 0.0 }
 0x2dd   :  { %v930_v32 = vadd.f32 %v1408_v9, %v874_v31  ;;  %v945_v35 = vmax.f32 %v929_v28, 0.0 }
 0x2de   :  { %v948_v34 = vmax.f32 %v932_v30, 0.0 }
 0x2df   :  { %v946_v36 = vmax.f32 %v930_v32, 0.0 }
 0x2e0   :  { %v960_v37 = vpack.c.bf16 %v948_v34, %v947_v33 }
 0x2e1   :  { %v959_v38 = vpack.c.bf16 %v946_v36, %v945_v35  ;;  %v1611_v39 = vpop.f32.mrb[24].mxu0 }
 0x2e2   :  { %v935_v6 = vadd.f32 %v1611_v39, %v1408_v9  ;;  %v887_v42 = vpop.f32.mrb[25].mxu0 }
 0x2e3   :  { %v933_v43 = vadd.f32 %v1408_v9, %v887_v42  ;;  %v1612_v44 = vpop.f32.mrb[26].mxu0  ;;  %1116 = vmatmul.mubr.bf16.gmra.mrb[20].mxu1 %v958_v23  ;;  %v981_v23 = vld [vmem:[%s2311_s12] sm:$0x3] }
 0x2e4   :  { %v936_v12 = vadd.f32 %v1612_v44, %v1408_v9  ;;  %v890_v45 = vpop.f32.mrb[27].mxu0  ;;  %1125 = vmatprep.mubr.bf16.mxu1 %v1724_v1  ;;  %v951_v51 = vmax.f32 %v935_v6, 0.0 }
 0x2e5   :  { %v934_v50 = vadd.f32 %v1408_v9, %v890_v45  ;;  %v949_v57 = vmax.f32 %v933_v43, 0.0 }
 0x2e6   :  { %v952_v56 = vmax.f32 %v936_v12, 0.0 }
 0x2e7   :  { %v950_v62 = vmax.f32 %v934_v50, 0.0 }
 0x2e8   :  { %v962_v63 = vpack.c.bf16 %v952_v56, %v951_v51 }
 0x2e9   :  { %v961_v3 = vpack.c.bf16 %v950_v62, %v949_v57  ;;  %v1615_v4 = vpop.f32.mrb[28].mxu0 }
 0x2ea   :  { %v939_v5 = vadd.f32 %v1615_v4, %v1408_v9  ;;  %v903_v7 = vpop.f32.mrb[29].mxu0 }
 0x2eb   :  { %v937_v8 = vadd.f32 %v1408_v9, %v903_v7  ;;  %v1616_v10 = vpop.f32.mrb[30].mxu0  ;;  %1126 = vmatmul.mubr.bf16.gmra.mrb[24].mxu1 %v959_v38 }
 0x2ec   :  { %v940_v11 = vadd.f32 %v1616_v10, %v1408_v9  ;;  %v906_v13 = vpop.f32.mrb[31].mxu0  ;;  %1135 = vmatprep.mubr.bf16.mxu1 %v1724_v1  ;;  %v955_v15 = vmax.f32 %v939_v5, 0.0 }
 0x2ed   :  { %v938_v14 = vadd.f32 %v1408_v9, %v906_v13  ;;  %v953_v17 = vmax.f32 %v937_v8, 0.0  ;;  %v983_v9 = vlaneseq }
 0x2ee   :  { %v956_v16 = vmax.f32 %v940_v11, 0.0 }
 0x2ef   :  { %v954_v18 = vmax.f32 %v938_v14, 0.0  ;;  %v984_v21 = vshrl.u32 %v983_v9, 7 }
 0x2f0   :  { %v964_v19 = vpack.c.bf16 %v956_v16, %v955_v15 }
 0x2f1   :  { %v963_v20 = vpack.c.bf16 %v954_v18, %v953_v17  ;;  %v989_v22 = vsub.s32 1, %v984_v21 }
 0x2f3   :  { %1136 = vmatmul.mubr.bf16.gmra.mrb[28].mxu1 %v960_v37  ;;  %v2192_v24 = vrot.slane %v981_v23, %v989_v22 }
 0x2f4   :  { %1145 = vmatprep.mubr.bf16.mxu1 %v1724_v1 }
 0x2fb   :  { %1146 = vmatmul.mubr.bf16.gmra.mrb[32].mxu1 %v961_v3 }
 0x2fc   :  { %1155 = vmatprep.mubr.bf16.mxu1 %v1724_v1 }
 0x303   :  { %1156 = vmatmul.mubr.bf16.gmra.mrb[36].mxu1 %v962_v63 }
 0x304   :  { %1165 = vmatprep.mubr.bf16.mxu1 %v1724_v1 }
 0x30b   :  { %1166 = vmatmul.mubr.bf16.gmra.mrb[40].mxu1 %v963_v20 }
 0x30c   :  { %1175 = vmatprep.mubr.bf16.mxu1 %v1724_v1  ;;  %v985_v1 = vsub.s32 0, %v984_v21 }
 0x30e   :  { %v2199_v36 = vrot.slane %v981_v23, %v985_v1 }
 0x313   :  { %1176 = vmatmul.mubr.bf16.gmra.mrb[44].mxu1 %v964_v19 }
 0x3ae   :  { %v1107_v25 = vpop.f32.mrb[16].mxu1 }
 0x3af   :  { %v1109_v26 = vpop.f32.mrb[17].mxu1  ;;  %v1108_v44 = vadd.f32 %v1107_v25, %v2199_v36 }
 0x3b0   :  { %v1110_v27 = vadd.f32 %v1109_v26, %v2192_v24  ;;  %v1111_v28 = vpop.f32.mrb[18].mxu1 }
 0x3b1   :  { %v1113_v29 = vpop.f32.mrb[19].mxu1  ;;  %v1112_v50 = vadd.f32 %v1111_v28, %v2199_v36  ;;  %v1186_v57 = vsub.f32 %v2071_v40, %v1108_v44 }
 0x3b2   :  { %v1202_v30 = vsub.f32 0.0, %v1110_v27  ;;  %v2196_v31 = vadd.f32 %v1113_v29, %v2192_v24 }
 0x3b3   :  { %v1187_v7 = vsub.f32 %v2076_v41, %v1112_v50 }
 0x3b4   :  { %v1218_v32 = vmul.f32 1.442695, %v1202_v30  ;;  %v1203_v33 = vsub.f32 0.0, %v2196_v31 }
 0x3b6   :  { %1692 = vpow2.f32 %v1218_v32  ;;  %v1220_v34 = vmul.f32 1.442695, %v1203_v33  ;;  %v1117_v35 = vpop.f32.mrb[20].mxu1 }
 0x3b7   :  { %v1119_v37 = vpop.f32.mrb[21].mxu1  ;;  %v1118_v40 = vadd.f32 %v1117_v35, %v2199_v36 }
 0x3b8   :  { %1694 = vpow2.f32 %v1220_v34  ;;  %v2202_v38 = vadd.f32 %v1119_v37, %v2192_v24  ;;  %v1121_v39 = vpop.f32.mrb[22].mxu1 }
 0x3b9   :  { %v1123_v6 = vpop.f32.mrb[23].mxu1  ;;  %v1122_v20 = vadd.f32 %v1121_v39, %v2199_v36  ;;  %v1188_v23 = vsub.f32 %v2086_v46, %v1118_v40 }
 0x3ba   :  { %v1204_v42 = vsub.f32 0.0, %v2202_v38  ;;  %v2206_v43 = vadd.f32 %v1123_v6, %v2192_v24 }
 0x3bb   :  { %v1189_v32 = vsub.f32 %v2091_v47, %v1122_v20 }
 0x3bc   :  { %v1222_v12 = vmul.f32 1.442695, %v1204_v42  ;;  %v1205_v45 = vsub.f32 0.0, %v2206_v43 }
 0x3be   :  { %1696 = vpow2.f32 %v1222_v12  ;;  %v1224_v51 = vmul.f32 1.442695, %v1205_v45  ;;  %v1127_v56 = vpop.f32.mrb[24].mxu1 }
 0x3bf   :  { %v1129_v62 = vpop.f32.mrb[25].mxu1  ;;  %v1128_v39 = vadd.f32 %v1127_v56, %v2199_v36 }
 0x3c0   :  { %v1693_v63 = vpop.eup %1692  ;;  %1698 = vpow2.f32 %v1224_v51  ;;  %v2213_v3 = vadd.f32 %v1129_v62, %v2192_v24  ;;  %v1131_v4 = vpop.f32.mrb[26].mxu1 }
 0x3c1   :  { %v1250_v5 = vmul.f32 %v1693_v63, %v1186_v57  ;;  %v1133_v8 = vpop.f32.mrb[27].mxu1  ;;  %v1132_v12 = vadd.f32 %v1131_v4, %v2199_v36  ;;  %v1190_v57 = vsub.f32 %v2096_v48, %v1128_v39 }
 0x3c2   :  { %v1695_v10 = vpop.eup %1694  ;;  %v1206_v11 = vsub.f32 0.0, %v2213_v3  ;;  %v2218_v13 = vadd.f32 %v1133_v8, %v2192_v24 }
 0x3c3   :  { %v1266_v14 = vmul.f32 %v1250_v5, %v1250_v5  ;;  %v1251_v15 = vmul.f32 %v1695_v10, %v1187_v7  ;;  %v1191_v4 = vsub.f32 %v2101_v49, %v1132_v12 }
 0x3c4   :  { %v1226_v16 = vmul.f32 1.442695, %v1206_v11  ;;  %v1207_v17 = vsub.f32 0.0, %v2218_v13 }
 0x3c5   :  { %v1282_v18 = vmul.f32 -0.5, %v1266_v14  ;;  %v1267_v19 = vmul.f32 %v1251_v15, %v1251_v15 }
 0x3c6   :  { %1700 = vpow2.f32 %v1226_v16  ;;  %v1228_v41 = vmul.f32 1.442695, %v1207_v17  ;;  %v1137_v9 = vpop.f32.mrb[28].mxu1 }
 0x3c7   :  { %v1298_v21 = vsub.f32 %v1282_v18, %v1110_v27  ;;  %v1283_v22 = vmul.f32 -0.5, %v1267_v19  ;;  %v1139_v25 = vpop.f32.mrb[29].mxu1  ;;  %v1138_v40 = vadd.f32 %v1137_v9, %v2199_v36 }
 0x3c8   :  { %v1697_v26 = vpop.eup %1696  ;;  %1702 = vpow2.f32 %v1228_v41  ;;  %v2225_v28 = vadd.f32 %v1139_v25, %v2192_v24  ;;  %v1141_v29 = vpop.f32.mrb[30].mxu1 }
 0x3c9   :  { %v1299_v30 = vsub.f32 %v1283_v22, %v2196_v31  ;;  %v1252_v1 = vmul.f32 %v1697_v26, %v1188_v23  ;;  %1314 = vxpose.xlu0.b32.start [1/16] %v1298_v21, 128  ;;  %v1143_v33 = vpop.f32.mrb[31].mxu1  ;;  %v1142_v19 = vadd.f32 %v1141_v29, %v2199_v36  ;;  %v1192_v22 = vsub.f32 %v2110_v52, %v1138_v40 }
 0x3ca   :  { %v1699_v34 = vpop.eup %1698  ;;  %v1208_v27 = vsub.f32 0.0, %v2225_v28  ;;  %v2231_v35 = vadd.f32 %v1143_v33, %v2192_v24 }
 0x3cb   :  { %v1268_v46 = vmul.f32 %v1252_v1, %v1252_v1  ;;  %v1253_v37 = vmul.f32 %v1699_v34, %v1189_v32  ;;  %v1193_v29 = vsub.f32 %v2115_v53, %v1142_v19 }
 0x3cc   :  { %v1230_v6 = vmul.f32 1.442695, %v1208_v27  ;;  %v1209_v42 = vsub.f32 0.0, %v2231_v35 }
 0x3cd   :  { %v1284_v44 = vmul.f32 -0.5, %v1268_v46  ;;  %v1269_v31 = vmul.f32 %v1253_v37, %v1253_v37  ;;  %1315 = vxpose.xlu0.b32.cont [2/16] %v1299_v30, 128 }
 0x3ce   :  { %1704 = vpow2.f32 %v1230_v6  ;;  %v1232_v47 = vmul.f32 1.442695, %v1209_v42  ;;  %v1147_v45 = vpop.f32.mrb[32].mxu1 }
 0x3cf   :  { %v1300_v50 = vsub.f32 %v1284_v44, %v2202_v38  ;;  %v1285_v51 = vmul.f32 -0.5, %v1269_v31  ;;  %v1149_v62 = vpop.f32.mrb[33].mxu1  ;;  %v1148_v46 = vadd.f32 %v1147_v45, %v2199_v36 }
 0x3d0   :  { %v1701_v63 = vpop.eup %1700  ;;  %1706 = vpow2.f32 %v1232_v47  ;;  %v2239_v56 = vadd.f32 %v1149_v62, %v2192_v24  ;;  %v1151_v5 = vpop.f32.mrb[34].mxu1 }
 0x3d1   :  { %v1301_v7 = vsub.f32 %v1285_v51, %v2206_v43  ;;  %v1254_v8 = vmul.f32 %v1701_v63, %v1190_v57  ;;  %1316 = vxpose.xlu0.b32.cont [3/16] %v1300_v50, 128  ;;  %v1153_v10 = vpop.f32.mrb[35].mxu1  ;;  %v1152_v42 = vadd.f32 %v1151_v5, %v2199_v36  ;;  %v1194_v47 = vsub.f32 %v2120_v54, %v1148_v46 }
 0x3d2   :  { %v1703_v11 = vpop.eup %1702  ;;  %v1210_v38 = vsub.f32 0.0, %v2239_v56  ;;  %v2245_v14 = vadd.f32 %v1153_v10, %v2192_v24 }
 0x3d3   :  { %v1270_v48 = vmul.f32 %v1254_v8, %v1254_v8  ;;  %v1255_v15 = vmul.f32 %v1703_v11, %v1191_v4  ;;  %v1195_v5 = vsub.f32 %v2125_v55, %v1152_v42 }
 0x3d4   :  { %v1234_v16 = vmul.f32 1.442695, %v1210_v38  ;;  %v1211_v17 = vsub.f32 0.0, %v2245_v14 }
 0x3d5   :  { %v1286_v18 = vmul.f32 -0.5, %v1270_v48  ;;  %v1271_v43 = vmul.f32 %v1255_v15, %v1255_v15  ;;  %1317 = vxpose.xlu0.b32.cont [4/16] %v1301_v7, 128 }
 0x3d6   :  { %1708 = vpow2.f32 %v1234_v16  ;;  %v1236_v49 = vmul.f32 1.442695, %v1211_v17  ;;  %v1157_v20 = vpop.f32.mrb[36].mxu1 }
 0x3d7   :  { %v1302_v41 = vsub.f32 %v1286_v18, %v2213_v3  ;;  %v1287_v21 = vmul.f32 -0.5, %v1271_v43  ;;  %v1159_v23 = vpop.f32.mrb[37].mxu1  ;;  %v1158_v11 = vadd.f32 %v1157_v20, %v2199_v36 }
 0x3d8   :  { %v1705_v25 = vpop.eup %1704  ;;  %1710 = vpow2.f32 %v1236_v49  ;;  %v2253_v9 = vadd.f32 %v1159_v23, %v2192_v24  ;;  %v1161_v26 = vpop.f32.mrb[38].mxu1 }
 0x3d9   :  { %v1303_v30 = vsub.f32 %v1287_v21, %v2218_v13  ;;  %v1256_v1 = vmul.f32 %v1705_v25, %v1192_v22  ;;  %1318 = vxpose.xlu0.b32.cont [5/16] %v1302_v41, 128  ;;  %v1163_v32 = vpop.f32.mrb[39].mxu1  ;;  %v1162_v40 = vadd.f32 %v1161_v26, %v2199_v36  ;;  %v1196_v43 = vsub.f32 %v2134_v58, %v1158_v11 }
 0x3da   :  { %v1707_v33 = vpop.eup %1706  ;;  %v1212_v3 = vsub.f32 0.0, %v2253_v9  ;;  %v2259_v34 = vadd.f32 %v1163_v32, %v2192_v24 }
 0x3db   :  { %v1272_v52 = vmul.f32 %v1256_v1, %v1256_v1  ;;  %v1257_v27 = vmul.f32 %v1707_v33, %v1193_v29  ;;  %v1197_v23 = vsub.f32 %v2139_v59, %v1162_v40 }
 0x3dc   :  { %v1238_v37 = vmul.f32 1.442695, %v1212_v3  ;;  %v1213_v39 = vsub.f32 0.0, %v2259_v34 }
 0x3dd   :  { %v1288_v6 = vmul.f32 -0.5, %v1272_v52  ;;  %v1273_v13 = vmul.f32 %v1257_v27, %v1257_v27  ;;  %1319 = vxpose.xlu0.b32.cont [6/16] %v1303_v30, 128 }
 0x3de   :  { %1712 = vpow2.f32 %v1238_v37  ;;  %v1240_v53 = vmul.f32 1.442695, %v1213_v39  ;;  %v1167_v44 = vpop.f32.mrb[40].mxu1 }
 0x3df   :  { %v1304_v31 = vsub.f32 %v1288_v6, %v2225_v28  ;;  %v1289_v12 = vmul.f32 -0.5, %v1273_v13  ;;  %v1169_v50 = vpop.f32.mrb[41].mxu1  ;;  %v1168_v58 = vadd.f32 %v1167_v44, %v2199_v36 }
 0x3e0   :  { %v1709_v51 = vpop.eup %1708  ;;  %1714 = vpow2.f32 %v1240_v53  ;;  %v2267_v45 = vadd.f32 %v1169_v50, %v2192_v24  ;;  %v1171_v57 = vpop.f32.mrb[42].mxu1 }
 0x3e1   :  { %v1305_v62 = vsub.f32 %v1289_v12, %v2231_v35  ;;  %v1258_v63 = vmul.f32 %v1709_v51, %v1194_v47  ;;  %1320 = vxpose.xlu0.b32.cont [7/16] %v1304_v31, 128  ;;  %v1173_v7 = vpop.f32.mrb[43].mxu1  ;;  %v1172_v27 = vadd.f32 %v1171_v57, %v2199_v36  ;;  %v1198_v37 = vsub.f32 %v2144_v60, %v1168_v58 }
 0x3e2   :  { %v1711_v8 = vpop.eup %1710  ;;  %v1214_v28 = vsub.f32 0.0, %v2267_v45  ;;  %v2273_v4 = vadd.f32 %v1173_v7, %v2192_v24 }
 0x3e3   :  { %v1274_v54 = vmul.f32 %v1258_v63, %v1258_v63  ;;  %v1259_v10 = vmul.f32 %v1711_v8, %v1195_v5  ;;  %v1199_v13 = vsub.f32 %v2149_v61, %v1172_v27 }
 0x3e4   :  { %v1242_v38 = vmul.f32 1.442695, %v1214_v28  ;;  %v1215_v48 = vsub.f32 0.0, %v2273_v4 }
 0x3e5   :  { %v1290_v15 = vmul.f32 -0.5, %v1274_v54  ;;  %v1275_v35 = vmul.f32 %v1259_v10, %v1259_v10  ;;  %1321 = vxpose.xlu0.b32.cont [8/16] %v1305_v62, 128 }
 0x3e6   :  { %1716 = vpow2.f32 %v1242_v38  ;;  %v1244_v55 = vmul.f32 1.442695, %v1215_v48  ;;  %v1177_v16 = vpop.f32.mrb[44].mxu1 }
 0x3e7   :  { %v1306_v17 = vsub.f32 %v1290_v15, %v2239_v56  ;;  %v1291_v18 = vmul.f32 -0.5, %v1275_v35  ;;  %v1179_v19 = vpop.f32.mrb[45].mxu1  ;;  %v1178_v31 = vadd.f32 %v1177_v16, %v2199_v36 }
 0x3e8   :  { %v1713_v49 = vpop.eup %1712  ;;  %1718 = vpow2.f32 %v1244_v55  ;;  %v1180_v20 = vadd.f32 %v1179_v19, %v2192_v24  ;;  %v1181_v41 = vpop.f32.mrb[46].mxu1 }
 0x3e9   :  { %v1307_v21 = vsub.f32 %v1291_v18, %v2245_v14  ;;  %v1260_v22 = vmul.f32 %v1713_v49, %v1196_v43  ;;  %1322 = vxpose.xlu0.b32.cont [9/16] %v1306_v17, 128  ;;  %v1183_v25 = vpop.f32.mrb[47].mxu1  ;;  %v1200_v51 = vsub.f32 %v2158_v0, %v1178_v31 }
 0x3ea   :  { %v1715_v26 = vpop.eup %1714  ;;  %v1216_v30 = vsub.f32 0.0, %v1180_v20  ;;  %v1184_v56 = vadd.f32 %v1183_v25, %v2192_v24 }
 0x3eb   :  { %v1276_v1 = vmul.f32 %v1260_v22, %v1260_v22  ;;  %v1261_v29 = vmul.f32 %v1715_v26, %v1197_v23 }
 0x3ec   :  { %v1246_v32 = vmul.f32 1.442695, %v1216_v30  ;;  %v1217_v33 = vsub.f32 0.0, %v1184_v56 }
 0x3ed   :  { %v1292_v3 = vmul.f32 -0.5, %v1276_v1  ;;  %v1277_v52 = vmul.f32 %v1261_v29, %v1261_v29  ;;  %1323 = vxpose.xlu0.b32.cont [10/16] %v1307_v21, 128 }
 0x3ee   :  { %1720 = vpow2.f32 %v1246_v32  ;;  %v1248_v14 = vmul.f32 1.442695, %v1217_v33 }
 0x3ef   :  { %v1308_v59 = vsub.f32 %v1292_v3, %v2253_v9  ;;  %v1293_v46 = vmul.f32 -0.5, %v1277_v52  ;;  %v1182_v9 = vadd.f32 %v1181_v41, %v2199_v36 }
 0x3f0   :  { %v1717_v39 = vpop.eup %1716  ;;  %1722 = vpow2.f32 %v1248_v14 }
 0x3f1   :  { %v1309_v24 = vsub.f32 %v1293_v46, %v2259_v34  ;;  %v1262_v6 = vmul.f32 %v1717_v39, %v1198_v37  ;;  %1324 = vxpose.xlu0.b32.cont [11/16] %v1308_v59, 128  ;;  %v1201_v62 = vsub.f32 %v2163_v2, %v1182_v9 }
 0x3f2   :  { %v1719_v42 = vpop.eup %1718 }
 0x3f3   :  { %v1278_v53 = vmul.f32 %v1262_v6, %v1262_v6  ;;  %v1263_v44 = vmul.f32 %v1719_v42, %v1199_v13 }
 0x3f5   :  { %v1294_v12 = vmul.f32 -0.5, %v1278_v53  ;;  %v1279_v47 = vmul.f32 %v1263_v44, %v1263_v44  ;;  %1325 = vxpose.xlu0.b32.cont [12/16] %v1309_v24, 128 }
 0x3f7   :  { %v1310_v60 = vsub.f32 %v1294_v12, %v2267_v45  ;;  %v1295_v50 = vmul.f32 -0.5, %v1279_v47 }
 0x3f8   :  { %v1721_v34 = vpop.eup %1720 }
 0x3f9   :  { %v1311_v57 = vsub.f32 %v1295_v50, %v2273_v4  ;;  %v1264_v61 = vmul.f32 %v1721_v34, %v1200_v51  ;;  %1326 = vxpose.xlu0.b32.cont [13/16] %v1310_v60, 128 }
 0x3fa   :  { %v1723_v63 = vpop.eup %1722 }
 0x3fb   :  { %v1280_v5 = vmul.f32 %v1264_v61, %v1264_v61  ;;  %v1265_v7 = vmul.f32 %v1723_v63, %v1201_v62 }
 0x3fd   :  { %v1296_v8 = vmul.f32 -0.5, %v1280_v5  ;;  %v1281_v28 = vmul.f32 %v1265_v7, %v1265_v7  ;;  %1327 = vxpose.xlu0.b32.cont [14/16] %v1311_v57, 128 }
 0x3ff   :  { %v1312_v36 = vsub.f32 %v1296_v8, %v1180_v20  ;;  %v1297_v54 = vmul.f32 -0.5, %v1281_v28 }
 0x401   :  { %v1313_v10 = vsub.f32 %v1297_v54, %v1184_v56  ;;  %1328 = vxpose.xlu0.b32.cont [15/16] %v1312_v36, 128 }
 0x405   :  { %1329 = vxpose.xlu0.b32.end [16/16] %v1313_v10, 128 }
 0x449   :  { %v1330_v45 = vpop.trf.xlu0 }
 0x44d   :  { %v1331_v0 = vpop.trf.xlu0 }
 0x44e   :  { %v1346_v40 = vadd.f32 %v1331_v0, %v1330_v45 }
 0x451   :  { %v1332_v11 = vpop.trf.xlu0 }
 0x452   :  { %v1347_v55 = vadd.f32 %v1346_v40, %v1332_v11 }
 0x455   :  { %v1333_v38 = vpop.trf.xlu0 }
 0x456   :  { %v1348_v17 = vadd.f32 %v1347_v55, %v1333_v38 }
 0x459   :  { %v1334_v4 = vpop.trf.xlu0 }
 0x45a   :  { %v1349_v18 = vadd.f32 %v1348_v17, %v1334_v4 }
 0x45d   :  { %v1335_v48 = vpop.trf.xlu0 }
 0x45e   :  { %v1350_v19 = vadd.f32 %v1349_v18, %v1335_v48 }
 0x461   :  { %v1336_v15 = vpop.trf.xlu0 }
 0x462   :  { %v1351_v49 = vadd.f32 %v1350_v19, %v1336_v15 }
 0x465   :  { %v1337_v2 = vpop.trf.xlu0 }
 0x466   :  { %v1352_v41 = vadd.f32 %v1351_v49, %v1337_v2 }
 0x469   :  { %v1338_v35 = vpop.trf.xlu0 }
 0x46a   :  { %v1353_v21 = vadd.f32 %v1352_v41, %v1338_v35 }
 0x46d   :  { %v1339_v16 = vpop.trf.xlu0 }
 0x46e   :  { %v1354_v23 = vadd.f32 %v1353_v21, %v1339_v16 }
 0x471   :  { %v1340_v43 = vpop.trf.xlu0 }
 0x472   :  { %v1355_v25 = vadd.f32 %v1354_v23, %v1340_v43 }
 0x475   :  { %v1341_v20 = vpop.trf.xlu0 }
 0x476   :  { %v1356_v30 = vadd.f32 %v1355_v25, %v1341_v20 }
 0x479   :  { %v1342_v22 = vpop.trf.xlu0 }
 0x47a   :  { %v1357_v56 = vadd.f32 %v1356_v30, %v1342_v22 }
 0x47d   :  { %v1343_v26 = vpop.trf.xlu0 }
 0x47e   :  { %v1358_v29 = vadd.f32 %v1357_v56, %v1343_v26 }
 0x481   :  { %v1344_v1 = vpop.trf.xlu0 }
 0x482   :  { %v1359_v58 = vadd.f32 %v1358_v29, %v1344_v1 }
 0x485   :  { %v1345_v32 = vpop.trf.xlu0 }
 0x486   :  { %v1360_v33 = vadd.f32 %v1359_v58, %v1345_v32 }
 0x488   :  { %v1361_v3 = vrot.slane %v1360_v33, 4 }
 0x48a   :  { %v1362_v52 = vadd.f32 %v1361_v3, %v1360_v33 }
 0x48c   :  { %v1363_v27 = vrot.slane %v1362_v52, 2 }
 0x48e   :  { %v1364_v14 = vadd.f32 %v1363_v27, %v1362_v52 }
 0x490   :  { %v1365_v59 = vrot.slane %v1364_v14, 1 }
 0x492   :  { %v1366_v46 = vadd.f32 %v1365_v59, %v1364_v14 }
 0x494   :  { %v1367_v37 = vadd.f32 -11.027263, %v1366_v46 }
 0x496   :  { %1368 = vst [vmem:[%s2312_s13] sm:$0x1] %v1367_v37 }

</bundles_post_ra>
